<compile_context>
chip_gen: v6e
topology: v6e:2x2x1
jax: 0.10.0
libtpu: 0.0.40
codegen_flags: <defaults>
</compile_context>

<pallas_src>
import jax
import jax.numpy as jnp
from jax.experimental import pallas as pl
from jax.experimental.pallas import tpu as pltpu


def value_net_kernel(x_ref, w1_ref, b1_ref, w2_ref, b2_ref, o_ref):
    # hidden = relu(x @ W1 + b1)   -- MXU matmul, f32 accumulation
    h = jnp.dot(x_ref[...], w1_ref[...], preferred_element_type=jnp.float32)
    h = jnp.maximum(h + b1_ref[...], 0.0)          # (TB, H) + (1, H)
    # value = sum_h(h * w2_row) + b2  -- VPU mul + XLU lane reduce (no MXU N=1 matmul)
    v = jnp.sum(h * w2_ref[...], axis=-1, keepdims=True) + b2_ref[0, 0]
    o_ref[...] = v.astype(o_ref.dtype)


def value_network_forward(state, w1, b1, w2_row, b2, *, block_b=256):
    """state: (B, num_inputs) f32 -> (B, 1) f32.

    w1: (num_inputs, hidden), b1: (1, hidden), w2_row: (1, hidden), b2: (1, 1).
    Batches larger than `block_b` are tiled (and padded to a multiple of
    `block_b`); small batches run as a single full-extent block.
    """
    B, D = state.shape
    H = w1.shape[1]

    if B <= block_b:
        tb = B                      # full-extent block: exempt from (8,128) rule
        b_pad = B
        x = state
    else:
        tb = block_b
        b_pad = pl.cdiv(B, tb) * tb
        x = jnp.pad(state, ((0, b_pad - B), (0, 0))) if b_pad != B else state

    grid = (b_pad // tb,)

    out = pl.pallas_call(
        value_net_kernel,
        out_shape=jax.ShapeDtypeStruct((b_pad, 1), jnp.float32),
        grid=grid,
        in_specs=[
            # state tile: marches over the batch axis
            pl.BlockSpec((tb, D), lambda i: (i, 0)),
            # weights/bias: constant block index => DMA'd once, resident in VMEM
            pl.BlockSpec((D, H), lambda i: (0, 0)),
            pl.BlockSpec((1, H), lambda i: (0, 0)),
            pl.BlockSpec((1, H), lambda i: (0, 0)),
            # scalar bias lives in SMEM (no padded VMEM tile / extra DMA slot)
            pl.BlockSpec(memory_space=pltpu.MemorySpace.SMEM),
        ],
        out_specs=pl.BlockSpec((tb, 1), lambda i: (i, 0)),
        compiler_params=pltpu.CompilerParams(
            dimension_semantics=("parallel",),   # megacore split on v7x
        ),
    )(x, w1, b1, w2_row, b2)

    return out[:B]


def init_params(key, num_inputs, hidden_size):
    """Deterministic init mirroring nn.Linear defaults (U[-1/sqrt(fan_in), ...])."""
    k1, k2, k3, k4 = jax.random.split(key, 4)
    bound1 = 1.0 / jnp.sqrt(num_inputs)
    bound2 = 1.0 / jnp.sqrt(hidden_size)
    # W1 stored (in, hidden) so the kernel computes x @ W1.
    w1 = jax.random.uniform(k1, (num_inputs, hidden_size), jnp.float32, -bound1, bound1)
    b1 = jax.random.uniform(k2, (1, hidden_size), jnp.float32, -bound1, bound1)
    # W2 stored as a (1, hidden) row; the kernel does a lane-reduce instead of a matmul.
    w2_row = jax.random.uniform(k3, (1, hidden_size), jnp.float32, -bound2, bound2)
    b2 = jax.random.uniform(k4, (1, 1), jnp.float32, -bound2, bound2)
    return w1, b1, w2_row, b2


if __name__ == "__main__":
    num_inputs = 8      # state dimension
    hidden_size = 32

    key = jax.random.PRNGKey(0)
    k_small, k_params, k_big = jax.random.split(key, 3)
    w1, b1, w2_row, b2 = init_params(k_params, num_inputs, hidden_size)

    def reference(x):
        # Same math as the PyTorch forward: relu(x @ W1 + b1) @ W2 + b2
        return jnp.maximum(x @ w1 + b1, 0.0) @ w2_row.T + b2

    # 1) Small batch (module-scale): single full-extent block, grid=(1,)
    state_small = jax.random.normal(k_small, (8, num_inputs), jnp.float32)
    out_small = jax.block_until_ready(
        value_network_forward(state_small, w1, b1, w2_row, b2))
    assert out_small.shape == (8, 1)
    assert jnp.allclose(out_small, reference(state_small), atol=1e-5, rtol=1e-5)

    # 2) Larger batch: exercises the tiled, weight-resident, parallel grid path.
    state_big = jax.random.normal(k_big, (512, num_inputs), jnp.float32)
    out_big = jax.block_until_ready(
        value_network_forward(state_big, w1, b1, w2_row, b2, block_b=256))
    assert out_big.shape == (512, 1)
    assert jnp.allclose(out_big, reference(state_big), atol=1e-5, rtol=1e-5)

    print("KERNEL_OK")
</pallas_src>

<mosaic_0001>
module attributes {stable_mosaic.version = 11 : i64} {
  func.func @value_net_kernel(%arg0: i32, %arg1: memref<8x8xf32, #tpu.memory_space<vmem>>, %arg2: memref<8x32xf32, #tpu.memory_space<vmem>>, %arg3: memref<1x32xf32, #tpu.memory_space<vmem>>, %arg4: memref<1x32xf32, #tpu.memory_space<vmem>>, %arg5: memref<1x1xf32, #tpu.memory_space<smem>>, %arg6: memref<8x1xf32, #tpu.memory_space<vmem>>) attributes {dimension_semantics = [#tpu.dimension_semantics<parallel>], iteration_bounds = array<i64: 1>, scalar_prefetch = 0 : i64, scratch_operands = 0 : i64, tpu.core_type = #tpu.core_type<tc>, window_params = [{transform_indices = @transform_0, window_bounds = array<i64: 8, 8>}, {pipeline_mode = #tpu.pipeline_mode<synchronous>, transform_indices = @transform_1, window_bounds = array<i64: 8, 32>}, {pipeline_mode = #tpu.pipeline_mode<synchronous>, transform_indices = @transform_2, window_bounds = array<i64: 1, 32>}, {pipeline_mode = #tpu.pipeline_mode<synchronous>, transform_indices = @transform_3, window_bounds = array<i64: 1, 32>}, {transform_indices = @transform_4, window_bounds = array<i64: 1, 1>}, {transform_indices = @transform_5, window_bounds = array<i64: 8, 1>}]} {
    %c0 = arith.constant 0 : index
    %c0_0 = arith.constant 0 : index
    %0 = vector.load %arg1[%c0, %c0_0] : memref<8x8xf32, #tpu.memory_space<vmem>>, vector<8x8xf32>
    %c0_1 = arith.constant 0 : index
    %c0_2 = arith.constant 0 : index
    %1 = vector.load %arg2[%c0_1, %c0_2] : memref<8x32xf32, #tpu.memory_space<vmem>>, vector<8x32xf32>
    %cst = arith.constant dense<0.000000e+00> : vector<8x32xf32>
    %2 = tpu.matmul %0, %1, %cst {dimension_numbers = #tpu.dot_dimension_numbers<[1], [0], [0], [1], [0, 0, 1, 1], [], []>} : vector<8x8xf32>, vector<8x32xf32>, vector<8x32xf32> -> vector<8x32xf32>
    %c0_3 = arith.constant 0 : index
    %c0_4 = arith.constant 0 : index
    %3 = vector.load %arg3[%c0_3, %c0_4] : memref<1x32xf32, #tpu.memory_space<vmem>>, vector<1x32xf32>
    %4 = vector.broadcast %3 : vector<1x32xf32> to vector<8x32xf32>
    %5 = arith.addf %2, %4 : vector<8x32xf32>
    %cst_5 = arith.constant 0.000000e+00 : f32
    %6 = vector.broadcast %cst_5 : f32 to vector<8x32xf32>
    %7 = arith.maximumf %5, %6 : vector<8x32xf32>
    %c0_6 = arith.constant 0 : index
    %c0_7 = arith.constant 0 : index
    %8 = vector.load %arg4[%c0_6, %c0_7] : memref<1x32xf32, #tpu.memory_space<vmem>>, vector<1x32xf32>
    %9 = vector.broadcast %8 : vector<1x32xf32> to vector<8x32xf32>
    %10 = arith.mulf %7, %9 : vector<8x32xf32>
    %cst_8 = arith.constant dense<0.000000e+00> : vector<8xf32>
    %11 = vector.multi_reduction <add>, %10, %cst_8 [1] : vector<8x32xf32> to vector<8xf32>
    %12 = vector.shape_cast %11 : vector<8xf32> to vector<8x1xf32>
    %c0_9 = arith.constant 0 : index
    %c0_10 = arith.constant 0 : index
    %13 = memref.load %arg5[%c0_9, %c0_10] : memref<1x1xf32, #tpu.memory_space<smem>>
    %14 = vector.broadcast %13 : f32 to vector<8x1xf32>
    %15 = arith.addf %12, %14 : vector<8x1xf32>
    %c0_11 = arith.constant 0 : index
    %c0_12 = arith.constant 0 : index
    %16 = vector.load %arg6[%c0_11, %c0_12] : memref<8x1xf32, #tpu.memory_space<vmem>>, vector<8x1xf32>
    tpu.vector_store %arg6[%c0_11, %c0_12], %15 {strides = array<i32>} : memref<8x1xf32, #tpu.memory_space<vmem>>, vector<8x1xf32>,
    return
  }
  func.func @transform_0(%arg0: i32) -> (i32, i32) {
    %c0_i32 = arith.constant 0 : i32
    %c0_i32_0 = arith.constant 0 : i32
    return %arg0, %c0_i32 : i32, i32
  }
  func.func @transform_1(%arg0: i32) -> (i32, i32) {
    %c0_i32 = arith.constant 0 : i32
    %c0_i32_0 = arith.constant 0 : i32
    %c0_i32_1 = arith.constant 0 : i32
    return %c0_i32, %c0_i32_0 : i32, i32
  }
  func.func @transform_2(%arg0: i32) -> (i32, i32) {
    %c0_i32 = arith.constant 0 : i32
    %c0_i32_0 = arith.constant 0 : i32
    %c0_i32_1 = arith.constant 0 : i32
    return %c0_i32, %c0_i32_0 : i32, i32
  }
  func.func @transform_3(%arg0: i32) -> (i32, i32) {
    %c0_i32 = arith.constant 0 : i32
    %c0_i32_0 = arith.constant 0 : i32
    %c0_i32_1 = arith.constant 0 : i32
    return %c0_i32, %c0_i32_0 : i32, i32
  }
  func.func @transform_4(%arg0: i32) -> (i32, i32) {
    %c0_i32 = arith.constant 0 : i32
    %c0_i32_0 = arith.constant 0 : i32
    %c0_i32_1 = arith.constant 0 : i32
    return %c0_i32, %c0_i32_0 : i32, i32
  }
  func.func @transform_5(%arg0: i32) -> (i32, i32) {
    %c0_i32 = arith.constant 0 : i32
    %c0_i32_0 = arith.constant 0 : i32
    return %arg0, %c0_i32 : i32, i32
  }
}

</mosaic_0001>

<bundles_post_ra>
// kernel: tpu_custom_call.1
= control target key start
LH: loop header
LB: loop body
LE: loop exit
PB: predicated region body
PF: predicated region fallthrough
CT: control target
= control target key end

     0   :  { %11 = vsyncpa [#allocation4], 0  ;;  %s262_s0 = inlined_call_operand.hbm [shape: f32[8,8], index: 0, kind: input, shape index: {}]   ;;  %s263_s1 = inlined_call_operand.hbm [shape: f32[8,32], index: 1, kind: input, shape index: {}]   ;;  %s264_s2 = inlined_call_operand.vmem [shape: f32[1,32], index: 2, kind: input, shape index: {}]   ;;  %s265_s3 = inlined_call_operand.vmem [shape: f32[1,32], index: 3, kind: input, shape index: {}]   ;;  %s266_s4 = inlined_call_operand.<no memory space> [shape: f32[1,1], index: 4, kind: input, shape index: {}]   ;;  %s267_s5 = inlined_call_operand.vmem [shape: f32[8,1], index: 5, kind: output, shape index: {}]  }
   0x1   :  { %12 = vsyncpa [#allocation6], 0  ;;  %s210_s18 = smov [#allocation3]   ;;  %s211_s20 = smov [#allocation5]  }
   0x2   :  { %s19_s19 = sshll.u32 %s210_s18, 4  ;;  %s29_s21 = sshll.u32 %s211_s20, 4  ;;  %s20_s19 = int_to_ptr.vmem [resolvable:$true] %s19_s19  ;;  %s30_s21 = int_to_ptr.vmem [resolvable:$true] %s29_s21 }
   0x3   :  { %s174_s22 = scalar_lea.vmem %s20_s19, 128  ;;  %p179_p1 = scmp.lt.s32.totalorder %s20_s19, %s20_s19 }
   0x4   :  { %p175_p0 = scmp.ne.s32.totalorder %s20_s19, %s174_s22  ;;  %p180_p2 = scmp.lt.s32.totalorder %s174_s22, %s174_s22 }
   0x6   :  { %p181_p3 = por %p180_p2, %p179_p1 }
   0x8   :  { %p182_p4 = pnand %p181_p3, %p175_p0 }
   0xa   :  { %185 = shalt.err (!%p182_p4)
}
   0xb   :  { %22 = dma.hbm_to_vmem [thread:$0]  %s262_s0, 128, %s20_s19, [#allocation4]  }
   0xc   :  { %s194_s25 = scalar_lea.vmem %s30_s21, 128  ;;  %p199_p6 = scmp.lt.s32.totalorder %s30_s21, %s30_s21 }
   0xd   :  { %p195_p5 = scmp.ne.s32.totalorder %s30_s21, %s194_s25  ;;  %p200_p7 = scmp.lt.s32.totalorder %s194_s25, %s194_s25 }
   0xf   :  { %p201_p8 = por %p200_p7, %p199_p6 }
  0x11   :  { %p202_p9 = pnand %p201_p8, %p195_p5 }
  0x13   :  { %205 = shalt.err (!%p202_p9)
}
  0x14   :  { %32 = dma.hbm_to_vmem [thread:$0]  %s263_s1, 128, %s30_s21, [#allocation6]  }
  0x15   :  { %206 = dma.done.wait [#allocation4], 128  }
  0x16   :  { %207 = vsyncadd [#allocation4], 4294967168 }
  0x17   :  { %208 = dma.done.wait [#allocation6], 128  }
  0x18   :  { %209 = vsyncadd [#allocation6], 4294967168  ;;  %v212_v0 = vmov 0.0   ;;  %vm213_vm0 = vmmov 0   ;;  %vm54_vm1 = vcmask 64512   ;;  %v46_v1 = vld [vmem:[#allocation5] sm:$0xff]  ;;  %v142_v11 = vstv %s266_s4 }
  0x19   :  { %157 = vmatprep.subr.mxu0 %v212_v0  ;;  %159 = vmatprep.mubr.msk.f32.mxu0 %vm213_vm0, %v212_v0  ;;  %v45_v2 = vld [vmem:[#allocation3] sm:$0xff]  ;;  %vm137_vm2 = vcmask 261120   ;;  %vm144_vm3 = vcmask 7168  }
  0x1a   :  { %158 = vmatpush3.msra.mxu0 %v46_v1  ;;  %v152_v3 = vld [vmem:[%s264_s2] ss:$0 sm:$0xff] }
  0x1b   :  { %160 = vmatmul.mubr.msk.f32.vlgmr.msra.gmra.mxu0 %vm54_vm1, %v45_v2  ;;  %v154_v7 = vld [vmem:[%s265_s3] ss:$0 sm:$0xff] }
  0xdb   :  { %v124_v4 = vpop.f32.mrf.mxu0 }
  0xdc   :  { %v125_v5 = vadd.f32 %v152_v3, %v124_v4 }
  0xdd   :  { %v161_v6 = vpop.f32.mrf.mxu0 }
  0xde   :  { %v128_v8 = vmax.f32 %v125_v5, 0.0 }
  0xe0   :  { %v136_v9 = vmul.f32 %v154_v7, %v128_v8 }
  0xe2   :  { %v138_v10 = vsel %vm137_vm2, %v136_v9, 0.0 }
  0xe3   :  { %139 = vadd.xlane.f32.xlu0 %v138_v10 }
 0x16c   :  { %v140_v12 = vpop.xlane.xlu0 %139 }
 0x16d   :  { %v143_v13 = vadd.f32 %v142_v11, %v140_v12 }
 0x16f   :  { %145 = vst.msk [vmem:[%s267_s5] sm:$0xff] %vm144_vm3, %v143_v13 }
 0x170   :  { %150 = vsyncpa [#allocation4], 1 }
 0x171   :  { %151 = vsyncpa [#allocation6], 1 }

</bundles_post_ra>
